<compile_context>
chip_gen: v7x
topology: tpu7x:2x2x1
jax: 0.10.0
libtpu: 0.0.40
codegen_flags: <defaults>
</compile_context>

<pallas_src>
import jax
import jax.numpy as jnp
from jax.experimental import pallas as pl
from jax.experimental.pallas import tpu as pltpu

LN_EPS = 1e-5


def _merge_norm_reduce_kernel(x_ref, w_e_ref, w_o_ref, b_ref, out_ref):
    # x_ref  : (TR, 2, W2, 2C)  parity 0 rows hold [x0|x2], parity 1 rows hold [x1|x3]
    # w_e_ref: (2C, O)  folded weight rows for the even-row half of the 4C channels
    # w_o_ref: (2C, O)  folded weight rows for the odd-row half
    # b_ref  : (1, O)   folded bias (beta @ W)
    # out_ref: (TR, W2, O)
    ev = x_ref[:, 0].astype(jnp.float32)      # (TR, W2, 2C)
    od = x_ref[:, 1].astype(jnp.float32)      # (TR, W2, 2C)
    tr, w2, twoc = ev.shape
    inv_4c = 1.0 / (2 * twoc)

    # Single-pass LayerNorm statistics over the full 4C channels of each token.
    s = jnp.sum(ev, axis=-1, keepdims=True) + jnp.sum(od, axis=-1, keepdims=True)
    s2 = jnp.sum(ev * ev, axis=-1, keepdims=True) + jnp.sum(od * od, axis=-1, keepdims=True)
    mean = s * inv_4c
    var = jnp.maximum(s2 * inv_4c - mean * mean, 0.0)
    rstd = jax.lax.rsqrt(var + LN_EPS)

    # Flatten the (TR, W2) token grid for the matmuls (layout-preserving when W2 % 8 == 0).
    xe = ((ev - mean) * rstd).reshape(tr * w2, twoc)
    xo = ((od - mean) * rstd).reshape(tr * w2, twoc)

    # gamma is folded into the weights, beta into the bias.
    acc = jnp.dot(xe.astype(w_e_ref.dtype), w_e_ref[...],
                  preferred_element_type=jnp.float32)
    acc = acc + jnp.dot(xo.astype(w_o_ref.dtype), w_o_ref[...],
                        preferred_element_type=jnp.float32)
    acc = acc + b_ref[...].astype(jnp.float32)
    out_ref[...] = acc.reshape(tr, w2, -1).astype(out_ref.dtype)


def patch_merging_2d(x, gamma, beta, w_red, *, tile_tokens=2048,
                     vmem_budget_bytes=6 * 1024 * 1024):
    """PatchMerging2D forward (channel_last).

    x:      (B, H, W, C)
    gamma:  (4C,)          LayerNorm weight
    beta:   (4C,)          LayerNorm bias
    w_red:  (4C, out_dim)  reduction weight, already transposed to (in, out)
    returns (B, ceil(H/2), ceil(W/2), out_dim)
    """
    B, H, W, C = x.shape
    four_c = 4 * C
    out_dim = w_red.shape[1]
    assert w_red.shape[0] == four_c and gamma.shape == (four_c,) and beta.shape == (four_c,)

    # Match F.pad(x, (0, 0, 0, W % 2, 0, H % 2)): zero-pad H/W up to even (ragged case only).
    if H % 2 != 0 or W % 2 != 0:
        x = jnp.pad(x, ((0, 0), (0, H % 2), (0, W % 2), (0, 0)))
        H, W = x.shape[1], x.shape[2]
    H2, W2 = H // 2, W // 2
    R = B * H2
    two_c = 2 * C

    # Free row-major view: (B, H, W, C) -> (B*H2, 2, W2, 2C).
    # The 2C channels of each (row-parity, w2) entry are [even-col C | odd-col C].
    xv = x.reshape(R, 2, W2, two_c)

    # Our 4C order is [x0 | x2 | x1 | x3]; PyTorch concat order is [x0 | x1 | x2 | x3].
    # Permute the parameters instead of the activations.
    perm = jnp.concatenate([
        jnp.arange(0, C), jnp.arange(2 * C, 3 * C),
        jnp.arange(C, 2 * C), jnp.arange(3 * C, 4 * C)])
    w_p = w_red[perm, :]
    # Fold LayerNorm affine into the projection: out = xhat @ (gamma * W) + beta @ W.
    w_fold = w_p * gamma[perm][:, None]
    bias = (beta[perm] @ w_p).reshape(1, out_dim).astype(jnp.float32)
    # TODO(synk): for bf16 deployments cast w_fold / the in-kernel xhat to bfloat16 to hit
    # the native MXU path on v6e/v7x; kept f32 here for parity with the f32 PyTorch module.
    w_e = w_fold[:two_c]
    w_o = w_fold[two_c:]

    # Tile sizing: target `tile_tokens` tokens per grid step, bounded by a conservative
    # VMEM budget (double-buffered in + out), and keep >= 2 grid steps (v7x megacore).
    itemsize = x.dtype.itemsize
    per_token = 2 * (four_c + out_dim) * itemsize
    max_tokens = max(W2, vmem_budget_bytes // max(per_token, 1))
    tokens = max(W2, min(tile_tokens, max_tokens))
    tr = max(1, tokens // W2)
    tr = min(tr, R)
    if R >= 2:
        tr = min(tr, -(-R // 2))          # ensure at least 2 grid steps
    grid = (pl.cdiv(R, tr),)

    out = pl.pallas_call(
        _merge_norm_reduce_kernel,
        out_shape=jax.ShapeDtypeStruct((R, W2, out_dim), x.dtype),
        grid_spec=pltpu.PrefetchScalarGridSpec(
            num_scalar_prefetch=0,
            grid=grid,
            in_specs=[
                pl.BlockSpec((tr, 2, W2, two_c), lambda i: (i, 0, 0, 0)),
                pl.BlockSpec((two_c, out_dim), lambda i: (0, 0)),
                pl.BlockSpec((two_c, out_dim), lambda i: (0, 0)),
                pl.BlockSpec((1, out_dim), lambda i: (0, 0)),
            ],
            out_specs=pl.BlockSpec((tr, W2, out_dim), lambda i: (i, 0, 0)),
        ),
        compiler_params=pltpu.CompilerParams(
            dimension_semantics=("parallel",)),
    )(xv, w_e, w_o, bias)

    return out.reshape(B, H2, W2, out_dim)


def _reference(x, gamma, beta, w_red):
    B, H, W, C = x.shape
    if H % 2 != 0 or W % 2 != 0:
        x = jnp.pad(x, ((0, 0), (0, H % 2), (0, W % 2), (0, 0)))
    x0 = x[:, 0::2, 0::2, :]
    x1 = x[:, 1::2, 0::2, :]
    x2 = x[:, 0::2, 1::2, :]
    x3 = x[:, 1::2, 1::2, :]
    m = jnp.concatenate([x0, x1, x2, x3], axis=-1).astype(jnp.float32)
    mean = jnp.mean(m, axis=-1, keepdims=True)
    var = jnp.mean((m - mean) ** 2, axis=-1, keepdims=True)
    y = (m - mean) * jax.lax.rsqrt(var + LN_EPS) * gamma + beta
    return jnp.einsum("bhwk,ko->bhwo", y, w_red)


if __name__ == "__main__":
    # Module config: dim=32 -> norm: LayerNorm(128), reduction: Linear(128 -> 64, bias=False).
    dim = 32
    B, H, W = 2, 16, 16
    four_c, out_dim = 4 * dim, 2 * dim

    key = jax.random.PRNGKey(0)
    kx, kw, kg, kb = jax.random.split(key, 4)
    x = jax.random.normal(kx, (B, H, W, dim), dtype=jnp.float32)

    # nn.Linear.weight is (out, in); the kernel takes the (in, out) transpose.
    w_linear = jax.random.normal(kw, (out_dim, four_c), dtype=jnp.float32) * 0.02
    w_red = w_linear.T
    gamma = 1.0 + 0.1 * jax.random.normal(kg, (four_c,), dtype=jnp.float32)
    beta = 0.05 * jax.random.normal(kb, (four_c,), dtype=jnp.float32)

    out = patch_merging_2d(x, gamma, beta, w_red)
    out = jax.block_until_ready(out)

    ref = _reference(x, gamma, beta, w_red)
    assert out.shape == (B, H // 2, W // 2, out_dim), out.shape
    max_err = float(jnp.max(jnp.abs(out - ref)))
    assert jnp.allclose(out, ref, atol=1e-4, rtol=1e-4), max_err
    print("KERNEL_OK")
</pallas_src>

<mosaic_0001>
module attributes {stable_mosaic.version = 11 : i64} {
  func.func @_merge_norm_reduce_kernel(%arg0: i32, %arg1: memref<8x2x8x64xf32, #tpu.memory_space<vmem>>, %arg2: memref<64x64xf32, #tpu.memory_space<vmem>>, %arg3: memref<64x64xf32, #tpu.memory_space<vmem>>, %arg4: memref<1x64xf32, #tpu.memory_space<vmem>>, %arg5: memref<8x8x64xf32, #tpu.memory_space<vmem>>) attributes {dimension_semantics = [#tpu.dimension_semantics<parallel>], iteration_bounds = array<i64: 2>, scalar_prefetch = 0 : i64, scratch_operands = 0 : i64, tpu.core_type = #tpu.core_type<tc>, window_params = [{transform_indices = @transform_0, window_bounds = array<i64: 8, 2, 8, 64>}, {pipeline_mode = #tpu.pipeline_mode<synchronous>, transform_indices = @transform_1, window_bounds = array<i64: 64, 64>}, {pipeline_mode = #tpu.pipeline_mode<synchronous>, transform_indices = @transform_2, window_bounds = array<i64: 64, 64>}, {pipeline_mode = #tpu.pipeline_mode<synchronous>, transform_indices = @transform_3, window_bounds = array<i64: 1, 64>}, {transform_indices = @transform_4, window_bounds = array<i64: 8, 8, 64>}]} {
    %c0 = arith.constant 0 : index
    %c0_0 = arith.constant 0 : index
    %c0_1 = arith.constant 0 : index
    %c0_2 = arith.constant 0 : index
    %0 = vector.load %arg1[%c0, %c0_0, %c0_1, %c0_2] : memref<8x2x8x64xf32, #tpu.memory_space<vmem>>, vector<8x1x8x64xf32>
    %1 = vector.shape_cast %0 : vector<8x1x8x64xf32> to vector<8x8x64xf32>
    %c0_3 = arith.constant 0 : index
    %c1 = arith.constant 1 : index
    %c0_4 = arith.constant 0 : index
    %c0_5 = arith.constant 0 : index
    %2 = vector.load %arg1[%c0_3, %c1, %c0_4, %c0_5] : memref<8x2x8x64xf32, #tpu.memory_space<vmem>>, vector<8x1x8x64xf32>
    %3 = vector.shape_cast %2 : vector<8x1x8x64xf32> to vector<8x8x64xf32>
    %cst = arith.constant dense<0.000000e+00> : vector<8x8xf32>
    %4 = vector.multi_reduction <add>, %1, %cst [2] : vector<8x8x64xf32> to vector<8x8xf32>
    %5 = vector.shape_cast %4 : vector<8x8xf32> to vector<8x8x1xf32>
    %cst_6 = arith.constant dense<0.000000e+00> : vector<8x8xf32>
    %6 = vector.multi_reduction <add>, %3, %cst_6 [2] : vector<8x8x64xf32> to vector<8x8xf32>
    %7 = vector.shape_cast %6 : vector<8x8xf32> to vector<8x8x1xf32>
    %8 = arith.addf %5, %7 : vector<8x8x1xf32>
    %9 = arith.mulf %1, %1 : vector<8x8x64xf32>
    %cst_7 = arith.constant dense<0.000000e+00> : vector<8x8xf32>
    %10 = vector.multi_reduction <add>, %9, %cst_7 [2] : vector<8x8x64xf32> to vector<8x8xf32>
    %11 = vector.shape_cast %10 : vector<8x8xf32> to vector<8x8x1xf32>
    %12 = arith.mulf %3, %3 : vector<8x8x64xf32>
    %cst_8 = arith.constant dense<0.000000e+00> : vector<8x8xf32>
    %13 = vector.multi_reduction <add>, %12, %cst_8 [2] : vector<8x8x64xf32> to vector<8x8xf32>
    %14 = vector.shape_cast %13 : vector<8x8xf32> to vector<8x8x1xf32>
    %15 = arith.addf %11, %14 : vector<8x8x1xf32>
    %cst_9 = arith.constant 7.812500e-03 : f32
    %16 = vector.broadcast %cst_9 : f32 to vector<8x8x1xf32>
    %17 = arith.mulf %8, %16 : vector<8x8x1xf32>
    %cst_10 = arith.constant 7.812500e-03 : f32
    %18 = vector.broadcast %cst_10 : f32 to vector<8x8x1xf32>
    %19 = arith.mulf %15, %18 : vector<8x8x1xf32>
    %20 = arith.mulf %17, %17 : vector<8x8x1xf32>
    %21 = arith.subf %19, %20 : vector<8x8x1xf32>
    %cst_11 = arith.constant 0.000000e+00 : f32
    %22 = vector.broadcast %cst_11 : f32 to vector<8x8x1xf32>
    %23 = arith.maximumf %21, %22 : vector<8x8x1xf32>
    %cst_12 = arith.constant 9.99999974E-6 : f32
    %24 = vector.broadcast %cst_12 : f32 to vector<8x8x1xf32>
    %25 = arith.addf %23, %24 : vector<8x8x1xf32>
    %26 = math.rsqrt %25 : vector<8x8x1xf32>
    %27 = vector.broadcast %17 : vector<8x8x1xf32> to vector<8x8x64xf32>
    %28 = arith.subf %1, %27 : vector<8x8x64xf32>
    %29 = vector.broadcast %26 : vector<8x8x1xf32> to vector<8x8x64xf32>
    %30 = arith.mulf %28, %29 : vector<8x8x64xf32>
    %31 = vector.shape_cast %30 : vector<8x8x64xf32> to vector<64x64xf32>
    %32 = vector.broadcast %17 : vector<8x8x1xf32> to vector<8x8x64xf32>
    %33 = arith.subf %3, %32 : vector<8x8x64xf32>
    %34 = vector.broadcast %26 : vector<8x8x1xf32> to vector<8x8x64xf32>
    %35 = arith.mulf %33, %34 : vector<8x8x64xf32>
    %36 = vector.shape_cast %35 : vector<8x8x64xf32> to vector<64x64xf32>
    %c0_13 = arith.constant 0 : index
    %c0_14 = arith.constant 0 : index
    %37 = vector.load %arg2[%c0_13, %c0_14] : memref<64x64xf32, #tpu.memory_space<vmem>>, vector<64x64xf32>
    %cst_15 = arith.constant dense<0.000000e+00> : vector<64x64xf32>
    %38 = tpu.matmul %31, %37, %cst_15 {dimension_numbers = #tpu.dot_dimension_numbers<[1], [0], [0], [1], [0, 0, 1, 1], [], []>} : vector<64x64xf32>, vector<64x64xf32>, vector<64x64xf32> -> vector<64x64xf32>
    %c0_16 = arith.constant 0 : index
    %c0_17 = arith.constant 0 : index
    %39 = vector.load %arg3[%c0_16, %c0_17] : memref<64x64xf32, #tpu.memory_space<vmem>>, vector<64x64xf32>
    %cst_18 = arith.constant dense<0.000000e+00> : vector<64x64xf32>
    %40 = tpu.matmul %36, %39, %cst_18 {dimension_numbers = #tpu.dot_dimension_numbers<[1], [0], [0], [1], [0, 0, 1, 1], [], []>} : vector<64x64xf32>, vector<64x64xf32>, vector<64x64xf32> -> vector<64x64xf32>
    %41 = arith.addf %38, %40 : vector<64x64xf32>
    %c0_19 = arith.constant 0 : index
    %c0_20 = arith.constant 0 : index
    %42 = vector.load %arg4[%c0_19, %c0_20] : memref<1x64xf32, #tpu.memory_space<vmem>>, vector<1x64xf32>
    %43 = vector.broadcast %42 : vector<1x64xf32> to vector<64x64xf32>
    %44 = arith.addf %41, %43 : vector<64x64xf32>
    %45 = vector.shape_cast %44 : vector<64x64xf32> to vector<8x8x64xf32>
    %c0_21 = arith.constant 0 : index
    %c0_22 = arith.constant 0 : index
    %c0_23 = arith.constant 0 : index
    %46 = vector.load %arg5[%c0_21, %c0_22, %c0_23] : memref<8x8x64xf32, #tpu.memory_space<vmem>>, vector<8x8x64xf32>
    tpu.vector_store %arg5[%c0_21, %c0_22, %c0_23], %45 {strides = array<i32>} : memref<8x8x64xf32, #tpu.memory_space<vmem>>, vector<8x8x64xf32>,
    return
  }
  func.func @transform_0(%arg0: i32) -> (i32, i32, i32, i32) {
    %c0_i32 = arith.constant 0 : i32
    %c0_i32_0 = arith.constant 0 : i32
    %c0_i32_1 = arith.constant 0 : i32
    %c0_i32_2 = arith.constant 0 : i32
    return %arg0, %c0_i32, %c0_i32_0, %c0_i32_1 : i32, i32, i32, i32
  }
  func.func @transform_1(%arg0: i32) -> (i32, i32) {
    %c0_i32 = arith.constant 0 : i32
    %c0_i32_0 = arith.constant 0 : i32
    %c0_i32_1 = arith.constant 0 : i32
    return %c0_i32, %c0_i32_0 : i32, i32
  }
  func.func @transform_2(%arg0: i32) -> (i32, i32) {
    %c0_i32 = arith.constant 0 : i32
    %c0_i32_0 = arith.constant 0 : i32
    %c0_i32_1 = arith.constant 0 : i32
    return %c0_i32, %c0_i32_0 : i32, i32
  }
  func.func @transform_3(%arg0: i32) -> (i32, i32) {
    %c0_i32 = arith.constant 0 : i32
    %c0_i32_0 = arith.constant 0 : i32
    %c0_i32_1 = arith.constant 0 : i32
    return %c0_i32, %c0_i32_0 : i32, i32
  }
  func.func @transform_4(%arg0: i32) -> (i32, i32, i32) {
    %c0_i32 = arith.constant 0 : i32
    %c0_i32_0 = arith.constant 0 : i32
    %c0_i32_1 = arith.constant 0 : i32
    return %arg0, %c0_i32, %c0_i32_0 : i32, i32, i32
  }
}

</mosaic_0001>

<bundles_post_ra>
// kernel: tpu_custom_call.1
= control target key start
LH: loop header
LB: loop body
LE: loop exit
PB: predicated region body
PF: predicated region fallthrough
CT: control target
= control target key end

     0   :  { %9 = vsyncpa [#allocation3], 0  ;;  %s1778_s0 = inlined_call_operand.hbm [shape: f32[16,2,8,64], index: 0, kind: input, shape index: {}]   ;;  %s1779_s1 = inlined_call_operand.hbm [shape: f32[64,64], index: 1, kind: input, shape index: {}]   ;;  %s1780_s2 = inlined_call_operand.hbm [shape: f32[64,64], index: 2, kind: input, shape index: {}]   ;;  %s1781_s3 = inlined_call_operand.vmem [shape: f32[1,64], index: 3, kind: input, shape index: {}]   ;;  %s1782_s4 = inlined_call_operand.hbm [shape: f32[16,8,64], index: 4, kind: output, shape index: {}]  }
   0x1   :  { %11 = vsyncpa [#allocation3 + $0x1], 0 }
   0x2   :  { %12 = vsyncpa [#allocation6], 0 }
   0x3   :  { %13 = vsyncpa [#allocation4], 0 }
   0x4   :  { %15 = vsyncpa [#allocation4 + $0x1], 0  ;;  %s1338_s15 = smov 0   ;;  %s1340_s16 = smov 0  }
   0x5   :  { %s1342_s17 = smov 0   ;;  %s1344_s18 = smov 0  }
   0x6 LB: > { %s1359_s19 = sadd.s32 4294967295, %s1303_s18   ;;  %s885_s20 = sadd.s32 4294967294, %s1303_s18   ;;  %s1303_s18 = sphi %s1344_s18, %s1802_s18   ;;  %s1299_s17 = sphi %s1342_s17, %s1801_s17   ;;  %s1295_s16 = sphi %s1340_s16, %s1800_s16   ;;  %s1291_s15 = sphi %s1338_s15, %s1799_s15  }
   0x7   : > { %p41_p0 = scmp.ne.s32.totalorder %s1295_s16, %s1291_s15  ;;  %p1783_p1 = scmp.eq.s32.totalorder %s1359_s19, 0 }
   0x8   : > { %p134_p3 = scmp.eq.s32.totalorder %s885_s20, 1  ;;  %p886_p5 = scmp.ge.s32.totalorder %s1303_s18, 1 }
   0x9   : > { %p1368_p4 = por %p1783_p1, %p41_p0  ;;  %p141_p7 = scmp.lt.s32.totalorder %s1303_s18, 3 }
   0xa   : > { %p1373_p6 = por %p134_p3, %p41_p0  ;;  %s1305_s24 = smov [#allocation5]  }
   0xb   : > { %s1786_s21 = scalar_select %p1368_p4, 1, 0 }
   0xc   : > { %s1787_s22 = scalar_select %p1373_p6, 1, 0 }
   0xd   : > { %p1378_p8 = pnand %p886_p5, %p141_p7  ;;  %s153_s25 = sshll.u32 %s1305_s24, 4  ;;  %s1382_s25 = int_to_ptr.vmem [resolvable:$true] %s153_s25 }
   0xe   : > { %s1306_s27 = smov [#allocation7]   ;;  %s1147_s5 = scalar_lea.hbm %s1779_s1, 1024 }
   0xf   : > { %p1072_p9 = pneg %p1378_p8  ;;  %s166_s28 = sshll.u32 %s1306_s27, 4  ;;  %s1393_s28 = int_to_ptr.vmem [resolvable:$true] %s166_s28 }
  0x10   : > { %p1148_p12 = scmp.ne.s32.totalorder %s1779_s1, %s1147_s5  ;;  %p1154_p5 = scmp.lt.u32.totalorder %s1147_s5, %s1779_s1 }
  0x11   : > { %p1389_p11 = pnand %p1072_p9, %p1783_p1 }
  0x13   : > { %p1149_p13 = pneg %p1389_p11 }
  0x15   : > { %p1150_p0 = pnand %p1149_p13, %p1148_p12 }
  0x17   : > { %p1151_p3 = pneg %p1150_p0 }
  0x19   : > { %p1156_p7 = pnand %p1154_p5, %p1151_p3 }
  0x1b   : > { %1159 = shalt.err (!%p1156_p7)
}
  0x1c   : > { %s1160_s10 = scalar_lea.vmem %s1382_s25, 1024  ;;  %p1168_p2 = scmp.lt.s32.totalorder %s1382_s25, %s1382_s25 }
  0x1d   : > { %p1161_p9 = scmp.ne.s32.totalorder %s1382_s25, %s1160_s10  ;;  %p1169_p12 = scmp.lt.s32.totalorder %s1160_s10, %s1160_s10 }
  0x1f   : > { %p1163_p10 = pnand %p1161_p9, %p1149_p13  ;;  %p1170_p0 = por %p1169_p12, %p1168_p2 }
  0x21   : > { %p1164_p1 = pneg %p1163_p10 }
  0x23   : > { %p1171_p6 = pnand %p1170_p0, %p1164_p1 }
  0x25   : > { %1174 = shalt.err (!%p1171_p6)
}
  0x26   : > { %s1307_s11 = smov 128   ;;  %s1308_s12 = smov 8  }
  0x27   : > { %1075 = dma.hbm_to_vmem [thread:$0]  (!%p1389_p11), %s1779_s1, 1024, %s1382_s25, [#allocation6], %s1307_s11, %s1307_s11, %s1308_s12  }
  0x28   : > { %s1175_s27 = scalar_lea.hbm %s1780_s2, 1024 }
  0x29   : > { %p1176_p1 = scmp.ne.s32.totalorder %s1780_s2, %s1175_s27  ;;  %p1182_p10 = scmp.lt.u32.totalorder %s1175_s27, %s1780_s2 }
  0x2b   : > { %p1178_p2 = pnand %p1176_p1, %p1149_p13 }
  0x2d   : > { %p1179_p6 = pneg %p1178_p2 }
  0x2f   : > { %p1184_p3 = pnand %p1182_p10, %p1179_p6 }
  0x31   : > { %1187 = shalt.err (!%p1184_p3)
}
  0x32   : > { %s1188_s25 = scalar_lea.vmem %s1393_s28, 1024  ;;  %p1196_p12 = scmp.lt.s32.totalorder %s1393_s28, %s1393_s28 }
  0x33   : > { %p1189_p5 = scmp.ne.s32.totalorder %s1393_s28, %s1188_s25  ;;  %p1197_p0 = scmp.lt.s32.totalorder %s1188_s25, %s1188_s25 }
  0x35   : > { %p1191_p7 = pnand %p1189_p5, %p1149_p13  ;;  %p1198_p1 = por %p1197_p0, %p1196_p12 }
  0x37   : > { %p1192_p9 = pneg %p1191_p7 }
  0x39   : > { %p1199_p2 = pnand %p1198_p1, %p1192_p9 }
  0x3b   : > { %1202 = shalt.err (!%p1199_p2)
}
  0x3c   : > { %1078 = dma.hbm_to_vmem [thread:$0]  (!%p1389_p11), %s1780_s2, 1024, %s1393_s28, [#allocation6], %s1307_s11, %s1307_s11, %s1308_s12  }
  0x3d   : > { %s1454_s26 = sadd.s32 1, %s1303_s18   ;;  %s28_s9 = sadd.s32 1, %s1299_s17 }
  0x3e   : > { %s25_s10 = ssub.s32 %s1303_s18, %s1454_s26  ;;  %p35_p13 = scmp.ne.s32.totalorder %s1299_s17, %s1295_s16 }
  0x3f   : > { %p26_p6 = scmp.eq.s32.totalorder %s25_s10, 0  ;;  %p36_p10 = scmp.eq.s32.totalorder %s1303_s18, 0 }
  0x40   : > { %p1790_p3 = scmp.eq.s32.totalorder %s1359_s19, 1  ;;  %p1089_p7 = scmp.lt.s32.totalorder %s1303_s18, 2 }
  0x41   : > { %s1470_s14 = scalar_select %p26_p6, %s1299_s17, %s28_s9  }
  0x42   : > { %p1464_p5 = por %p1790_p3, %p35_p13  ;;  %p37_p9 = por %p36_p10, %p35_p13 }
  0x43   : > { %s183_s20 = sand.u32 1, %s1299_s17   ;;  %s930_s28 = sshll.u32 %s1303_s18, 11 }
  0x44   : > { %s1791_s13 = scalar_select %p1464_p5, 1, 0 }
  0x45   : > { %s890_s24 = sshll.u32 %s183_s20, 7  ;;  %s1477_s30 = scalar_lea.hbm %s1778_s0, %s930_s28 }
  0x46   : > { %s187_s5 = scalar_lea.vmem [#allocation2], %s890_s24  ;;  %p1481_p11 = pnand %p1089_p7, %p37_p9 }
  0x47   : > { %s195_s6 = sshll.u32 %s187_s5, 4  ;;  %s1485_s7 = scalar_lea.sflag [#allocation3], %s183_s20  ;;  %s1479_s6 = int_to_ptr.vmem [resolvable:$true] %s195_s6 }
  0x48   : > { %s1203_s8 = scalar_lea.hbm %s1477_s30, 2048  ;;  %p1205_p0 = pneg %p1481_p11 }
  0x49   : > { %p1204_p12 = scmp.ne.s32.totalorder %s1477_s30, %s1203_s8  ;;  %s1208_s24 = scalar_lea.hbm %s1778_s0, 4096 }
  0x4a   : > { %p1209_p13 = scmp.lt.u32.totalorder %s1477_s30, %s1778_s0  ;;  %p1210_p6 = scmp.lt.u32.totalorder %s1208_s24, %s1203_s8 }
  0x4b   : > { %p1206_p1 = pnand %p1205_p0, %p1204_p12  ;;  %p1212_p3 = scmp.lt.u32.totalorder %s1203_s8, %s1477_s30 }
  0x4c   : > { %p1211_p10 = por %p1210_p6, %p1209_p13 }
  0x4d   : > { %p1207_p2 = pneg %p1206_p1 }
  0x4e   : > { %p1213_p7 = por %p1212_p3, %p1211_p10 }
  0x50   : > { %p1214_p9 = pnand %p1213_p7, %p1207_p2 }
  0x52   : > { %1217 = shalt.err (!%p1214_p9)
}
  0x53   : > { %s1218_s20 = scalar_lea.vmem %s1479_s6, 2048  ;;  %s1309_s29 = smov [#allocation2]  }
  0x54   : > { %p1219_p12 = scmp.ne.s32.totalorder %s1479_s6, %s1218_s20  ;;  %s1223_s5 = sshll.u32 %s1309_s29, 4  ;;  %s1224_s5 = int_to_ptr.vmem [resolvable:$false] %s1223_s5 }
  0x55   : > { %s1225_s9 = scalar_lea.vmem %s1224_s5, 4096  ;;  %p1226_p4 = scmp.lt.s32.totalorder %s1479_s6, %s1224_s5 }
  0x56   : > { %p1221_p1 = pnand %p1219_p12, %p1205_p0  ;;  %p1227_p13 = scmp.lt.s32.totalorder %s1225_s9, %s1218_s20 }
  0x58   : > { %p1222_p5 = pneg %p1221_p1  ;;  %p1228_p6 = por %p1227_p13, %p1226_p4 }
  0x5a   : > { %p1229_p10 = pnand %p1228_p6, %p1222_p5 }
  0x5c   : > { %1232 = shalt.err (!%p1229_p10)
}
  0x5d   : > { %1082 = dma.hbm_to_vmem [thread:$0]  (!%p1481_p11), %s1477_s30, 2048, %s1479_s6, %s1485_s7, %s1307_s11, %s1307_s11, %s1308_s12  }
  0x5e   : > { %207 = sbr.rel (%p1378_p8) target bundleno = 564 (0x234), region = 36  ;;  %s1519_s8 = sand.u32 (!%p1378_p8), 1, %s1295_s16  }
  0x5f   : > { %s895_s10 = sshll.u32 (!%p1378_p8), %s1519_s8, 7  ;;  %s210_s24 = scalar_lea.sflag (!%p1378_p8), [#allocation3], %s1519_s8 }
  0x60   : > { %s1523_s28 = scalar_lea.vmem (!%p1378_p8), [#allocation2], %s895_s10  ;;  %p1793_p4 = scmp.ne.s32.totalorder (!%p1378_p8), %s1786_s21, 0 }
  0x65   : > { %1278 = dma.done.wait (%p1793_p4), %s210_s24, 2048  }
  0x66   : > { %1280 = vsyncadd (%p1793_p4), %s210_s24, 4294965248  ;;  %p1794_p5 = scmp.eq.s32.totalorder %s1359_s19, 0 }
  0x68   : > { %1282 = dma.done.wait (%p1794_p5), [#allocation6], 2048   ;;  %p1795_p8 = pmov %p1794_p5 }
  0x69   : > { %vm265_vm0 = vcmask 523264   ;;  %v1534_v0 = vld [vmem:[%s1523_s28 + $0x10] sm:$0xff]  ;;  %v1537_v1 = vld [vmem:[%s1523_s28] sm:$0xff]  ;;  %v1540_v2 = vld [vmem:[%s1523_s28 + $0x18] sm:$0xff]  ;;  %s898_s21 = sshll.u32 %s1519_s8, 6  ;;  %s931_s30 = sshll.u32 %s1359_s19, 10 }
  0x6a   : > { %1284 = vsyncadd (%p1795_p8), [#allocation6], 4294965248  ;;  %v269_v3 = vsel %vm265_vm0, %v1534_v0, 0.0  ;;  %v266_v4 = vsel %vm265_vm0, %v1537_v1, 0.0  ;;  %v1547_v5 = vld [vmem:[%s1523_s28 + $0x8] sm:$0xff]  ;;  %v293_v6 = vsel %vm265_vm0, %v1540_v2, 0.0  ;;  %v322_v9 = vmul.f32 %v1537_v1, %v1537_v1  ;;  %s1728_s27 = scalar_lea.hbm %s1782_s4, %s931_s30 }
  0x6b   : > { %270 = vadd.xlane.f32.xlu1 %v269_v3  ;;  %267 = vadd.xlane.f32.xlu0 %v266_v4  ;;  %v290_v7 = vsel %vm265_vm0, %v1547_v5, 0.0  ;;  %v354_v8 = vmul.f32 %v1547_v5, %v1547_v5  ;;  %v355_v12 = vmul.f32 %v1540_v2, %v1540_v2  ;;  %v323_v13 = vmul.f32 %v1534_v0, %v1534_v0  ;;  %v1566_v16 = vld [vmem:[%s1523_s28 + $0x28] sm:$0xff]  ;;  %v1569_v17 = vld [vmem:[%s1523_s28 + $0x20] sm:$0xff]  ;;  %v1576_v20 = vld [vmem:[%s1523_s28 + $0x38] sm:$0xff]  ;;  %s1709_s12 = scalar_lea.vmem [#allocation8], %s898_s21  ;;  %s780_s19 = scalar_lea.sflag [#allocation4], %s1519_s8 }
  0x6c   : > { %v330_v11 = vsel %vm265_vm0, %v322_v9, 0.0  ;;  %v296_v18 = vsel %vm265_vm0, %v1566_v16, 0.0  ;;  %v272_v19 = vsel %vm265_vm0, %v1569_v17, 0.0  ;;  %v1579_v21 = vld [vmem:[%s1523_s28 + $0x30] sm:$0xff]  ;;  %v299_v22 = vsel %vm265_vm0, %v1576_v20, 0.0  ;;  %v1598_v32 = vld [vmem:[%s1523_s28 + $0x48] sm:$0xff] }
  0x6d   : > { %v362_v10 = vsel %vm265_vm0, %v354_v8, 0.0  ;;  %v365_v14 = vsel %vm265_vm0, %v355_v12, 0.0  ;;  %v333_v15 = vsel %vm265_vm0, %v323_v13, 0.0  ;;  %v275_v23 = vsel %vm265_vm0, %v1579_v21, 0.0  ;;  %v1601_v33 = vld [vmem:[%s1523_s28 + $0x40] sm:$0xff]  ;;  %v1608_v36 = vld [vmem:[%s1523_s28 + $0x58] sm:$0xff] }
  0x6e   : > { %v356_v24 = vmul.f32 %v1566_v16, %v1566_v16  ;;  %v324_v25 = vmul.f32 %v1569_v17, %v1569_v17  ;;  %v357_v28 = vmul.f32 %v1576_v20, %v1576_v20  ;;  %v325_v29 = vmul.f32 %v1579_v21, %v1579_v21  ;;  %v1611_v37 = vld [vmem:[%s1523_s28 + $0x50] sm:$0xff]  ;;  %v490_v38 = vld [vmem:[#allocation7] sm:$0xff]  ;;  %v491_v39 = vld [vmem:[#allocation7 + $0x8] sm:$0xff]  ;;  %s793_s6 = sshll.u32 %s1709_s12, 4  ;;  %p1796_p0 = scmp.ne.s32.totalorder %s1791_s13, 0  ;;  %s1730_s6 = int_to_ptr.vmem [resolvable:$true] %s793_s6 }
  0x6f   : > { %294 = vadd.xlane.f32.xlu1 %v293_v6  ;;  %291 = vadd.xlane.f32.xlu0 %v290_v7  ;;  %v302_v34 = vsel %vm265_vm0, %v1598_v32, 0.0  ;;  %v278_v35 = vsel %vm265_vm0, %v1601_v33, 0.0  ;;  %v482_v40 = vld [vmem:[#allocation5] sm:$0xff]  ;;  %v305_v41 = vsel %vm265_vm0, %v1608_v36, 0.0  ;;  %v1020_v42 = vpack.c.bf16 %v491_v39, %v490_v38  ;;  %v483_v43 = vld [vmem:[#allocation5 + $0x8] sm:$0xff]  ;;  %v492_v48 = vld [vmem:[#allocation7 + $0x10] sm:$0xff] }
  0x70   : > { %v368_v26 = vsel %vm265_vm0, %v356_v24, 0.0  ;;  %v336_v27 = vsel %vm265_vm0, %v324_v25, 0.0  ;;  %v371_v30 = vsel %vm265_vm0, %v357_v28, 0.0  ;;  %v339_v31 = vsel %vm265_vm0, %v325_v29, 0.0  ;;  %v493_v49 = vld [vmem:[#allocation7 + $0x18] sm:$0xff]  ;;  %v484_v50 = vld [vmem:[#allocation5 + $0x10] sm:$0xff] }
  0x71   : > { %v281_v44 = vsel %vm265_vm0, %v1611_v37, 0.0  ;;  %v358_v45 = vmul.f32 %v1598_v32, %v1598_v32  ;;  %v326_v46 = vmul.f32 %v1601_v33, %v1601_v33  ;;  %v1036_v47 = vpack.c.bf16 %v483_v43, %v482_v40  ;;  %1021 = vmatprep.subr.bf16.mxu1 %v1020_v42  ;;  %v485_v53 = vld [vmem:[#allocation5 + $0x18] sm:$0xff]  ;;  %v494_v58 = vld [vmem:[#allocation7 + $0x20] sm:$0xff]  ;;  %v495_v59 = vld [vmem:[#allocation7 + $0x28] sm:$0xff]  ;;  %s1233_s20 = scalar_lea.vmem %s1730_s6, 1024  ;;  %s1310_s29 = smov [#allocation8]  }
  0x72   : > { %1023 = vmatpush3.bf16.msra.mxu1 %v1020_v42  ;;  %v359_v51 = vmul.f32 %v1608_v36, %v1608_v36  ;;  %v1024_v52 = vpack.c.bf16 %v493_v49, %v492_v48  ;;  %v327_v56 = vmul.f32 %v1611_v37, %v1611_v37  ;;  %v1040_v57 = vpack.c.bf16 %v485_v53, %v484_v50  ;;  %v486_v60 = vld [vmem:[#allocation5 + $0x20] sm:$0xff]  ;;  %v487_v62 = vld [vmem:[#allocation5 + $0x28] sm:$0xff]  ;;  %v496_v8 = vld [vmem:[#allocation7 + $0x30] sm:$0xff]  ;;  %p1234_p11 = scmp.ne.s32.totalorder %s1730_s6, %s1233_s20  ;;  %s1237_s5 = sshll.u32 %s1310_s29, 4  ;;  %s1238_s5 = int_to_ptr.vmem [resolvable:$false] %s1237_s5 }
  0x73   : > { %363 = vadd.xlane.f32.xlu1 %v362_v10  ;;  %331 = vadd.xlane.f32.xlu0 %v330_v11  ;;  %v374_v54 = vsel %vm265_vm0, %v358_v45, 0.0  ;;  %v342_v55 = vsel %vm265_vm0, %v326_v46, 0.0  ;;  %v1028_v61 = vpack.c.bf16 %v495_v59, %v494_v58  ;;  %v1044_v4 = vpack.c.bf16 %v487_v62, %v486_v60  ;;  %v1630_v6 = vld [vmem:[%s1523_s28 + $0x68] sm:$0xff]  ;;  %v1633_v7 = vld [vmem:[%s1523_s28 + $0x60] sm:$0xff]  ;;  %v497_v9 = vld [vmem:[#allocation7 + $0x38] sm:$0xff]  ;;  %s1239_s9 = scalar_lea.vmem %s1238_s5, 2048  ;;  %p1240_p7 = scmp.lt.s32.totalorder %s1730_s6, %s1238_s5 }
  0x74   : > { %1037 = vmatprep.subr.bf16.mxu0 %v1036_v47  ;;  %1025 = vmatprep.subr.bf16.mxu1 %v1024_v52  ;;  %v377_v63 = vsel %vm265_vm0, %v359_v51, 0.0  ;;  %v345_v3 = vsel %vm265_vm0, %v327_v56, 0.0  ;;  %v488_v10 = vld [vmem:[#allocation5 + $0x30] sm:$0xff]  ;;  %v1032_v11 = vpack.c.bf16 %v497_v9, %v496_v8  ;;  %v489_v12 = vld [vmem:[#allocation5 + $0x38] sm:$0xff]  ;;  %v308_v13 = vsel %vm265_vm0, %v1630_v6, 0.0  ;;  %p1235_p2 = pnand %p1234_p11, %p1796_p0  ;;  %p1241_p9 = scmp.lt.s32.totalorder %s1239_s9, %s1233_s20 }
  0x75   : > { %1039 = vmatpush3.bf16.msra.mxu0 %v1036_v47  ;;  %v360_v24 = vmul.f32 %v1630_v6, %v1630_v6  ;;  %v328_v25 = vmul.f32 %v1633_v7, %v1633_v7 }
  0x76   : > { %1041 = vmatprep.subr.bf16.mxu0 %v1040_v57  ;;  %1027 = vmatpush3.bf16.msra.mxu1 %v1024_v52  ;;  %p1236_p3 = pneg %p1235_p2  ;;  %p1242_p12 = por %p1241_p9, %p1240_p7 }
  0x77   : > { %366 = vadd.xlane.f32.xlu1 %v365_v14  ;;  %334 = vadd.xlane.f32.xlu0 %v333_v15  ;;  %v284_v14 = vsel %vm265_vm0, %v1633_v7, 0.0  ;;  %v1048_v15 = vpack.c.bf16 %v489_v12, %v488_v10 }
  0x78   : > { %1029 = vmatprep.subr.bf16.mxu1 %v1028_v61  ;;  %p1243_p1 = pnand %p1242_p12, %p1236_p3 }
  0x79   : > { %1043 = vmatpush3.bf16.msra.mxu0 %v1040_v57 }
  0x7a   : > { %1045 = vmatprep.subr.bf16.mxu0 %v1044_v4  ;;  %1031 = vmatpush3.bf16.msra.mxu1 %v1028_v61 }
  0x7b   : > { %297 = vadd.xlane.f32.xlu1 %v296_v18  ;;  %273 = vadd.xlane.f32.xlu0 %v272_v19  ;;  %v1640_v18 = vld [vmem:[%s1523_s28 + $0x78] sm:$0xff]  ;;  %v1643_v19 = vld [vmem:[%s1523_s28 + $0x70] sm:$0xff] }
  0x7c   : > { %1033 = vmatprep.subr.bf16.mxu1 %v1032_v11  ;;  %v361_v28 = vmul.f32 %v1640_v18, %v1640_v18  ;;  %v329_v29 = vmul.f32 %v1643_v19, %v1643_v19 }
  0x7d   : > { %1047 = vmatpush3.bf16.msra.mxu0 %v1044_v4 }
  0x7e   : > { %1049 = vmatprep.subr.bf16.mxu0 %v1048_v15  ;;  %1035 = vmatpush3.bf16.msra.mxu1 %v1032_v11 }
  0x7f   : > { %300 = vadd.xlane.f32.xlu1 %v299_v22  ;;  %276 = vadd.xlane.f32.xlu0 %v275_v23  ;;  %v311_v22 = vsel %vm265_vm0, %v1640_v18, 0.0  ;;  %v287_v23 = vsel %vm265_vm0, %v1643_v19, 0.0 }
  0x81   : > { %1051 = vmatpush3.bf16.msra.mxu0 %v1048_v15 }
  0x83   : > { %369 = vadd.xlane.f32.xlu1 %v368_v26  ;;  %337 = vadd.xlane.f32.xlu0 %v336_v27  ;;  %v380_v26 = vsel %vm265_vm0, %v360_v24, 0.0  ;;  %v348_v27 = vsel %vm265_vm0, %v328_v25, 0.0 }
  0x87   : > { %372 = vadd.xlane.f32.xlu1 %v371_v30  ;;  %340 = vadd.xlane.f32.xlu0 %v339_v31  ;;  %v383_v30 = vsel %vm265_vm0, %v361_v28, 0.0  ;;  %v351_v31 = vsel %vm265_vm0, %v329_v29, 0.0 }
  0x8b   : > { %303 = vadd.xlane.f32.xlu1 %v302_v34  ;;  %279 = vadd.xlane.f32.xlu0 %v278_v35 }
  0x8f   : > { %306 = vadd.xlane.f32.xlu1 %v305_v41  ;;  %282 = vadd.xlane.f32.xlu0 %v281_v44 }
  0x93   : > { %375 = vadd.xlane.f32.xlu1 %v374_v54  ;;  %343 = vadd.xlane.f32.xlu0 %v342_v55 }
  0x97   : > { %378 = vadd.xlane.f32.xlu1 %v377_v63  ;;  %346 = vadd.xlane.f32.xlu0 %v345_v3 }
  0x9b   : > { %309 = vadd.xlane.f32.xlu1 %v308_v13  ;;  %285 = vadd.xlane.f32.xlu0 %v284_v14 }
  0x9f   : > { %312 = vadd.xlane.f32.xlu1 %v311_v22  ;;  %288 = vadd.xlane.f32.xlu0 %v287_v23 }
  0xa3   : > { %381 = vadd.xlane.f32.xlu1 %v380_v26  ;;  %349 = vadd.xlane.f32.xlu0 %v348_v27 }
  0xa7   : > { %384 = vadd.xlane.f32.xlu1 %v383_v30  ;;  %352 = vadd.xlane.f32.xlu0 %v351_v31 }
  0xf8   : > { %v271_v34 = vpop.xlane.xlu1 %270  ;;  %v268_v35 = vpop.xlane.xlu0 %267 }
  0xfc   : > { %v295_v38 = vpop.xlane.xlu1 %294  ;;  %v292_v39 = vpop.xlane.xlu0 %291 }
  0xfd   : > { %v314_v40 = vadd.f32 %v292_v39, %v268_v35  ;;  %v315_v41 = vadd.f32 %v295_v38, %v271_v34 }
  0xff   : > { %v394_v42 = vmul.f32 0.0078125, %v314_v40  ;;  %v395_v46 = vmul.f32 0.0078125, %v315_v41 }
 0x100   : > { %v364_v43 = vpop.xlane.xlu1 %363  ;;  %v332_v44 = vpop.xlane.xlu0 %331 }
 0x101   : > { %v386_v45 = vadd.f32 %v364_v43, %v332_v44  ;;  %v410_v47 = vmul.f32 %v394_v42, %v394_v42  ;;  %v411_v54 = vmul.f32 %v395_v46, %v395_v46  ;;  %v466_v23 = vsub.f32 %v1547_v5, %v394_v42 }
 0x102   : > { %v450_v24 = vsub.f32 %v1537_v1, %v394_v42  ;;  %v451_v35 = vsub.f32 %v1534_v0, %v395_v46  ;;  %v467_v38 = vsub.f32 %v1540_v2, %v395_v46 }
 0x103   : > { %v402_v48 = vmul.f32 0.0078125, %v386_v45 }
 0x104   : > { %v367_v49 = vpop.xlane.xlu1 %366  ;;  %v335_v50 = vpop.xlane.xlu0 %334 }
 0x105   : > { %v418_v51 = vsub.f32 %v402_v48, %v410_v47  ;;  %v387_v52 = vadd.f32 %v367_v49, %v335_v50 }
 0x107   : > { %v426_v53 = vmax.f32 %v418_v51, 0.0  ;;  %v403_v55 = vmul.f32 0.0078125, %v387_v52 }
 0x108   : > { %v298_v56 = vpop.xlane.xlu1 %297  ;;  %v274_v57 = vpop.xlane.xlu0 %273 }
 0x109   : > { %v434_v58 = vadd.f32 1e-05, %v426_v53  ;;  %v419_v59 = vsub.f32 %v403_v55, %v411_v54  ;;  %v316_v61 = vadd.f32 %v298_v56, %v274_v57 }
 0x10b   : > { %1131 = vrsqrt.f32 %v434_v58  ;;  %v427_v60 = vmax.f32 %v419_v59, 0.0  ;;  %v396_v4 = vmul.f32 0.0078125, %v316_v61 }
 0x10c   : > { %v301_v62 = vpop.xlane.xlu1 %300  ;;  %v277_v63 = vpop.xlane.xlu0 %276 }
 0x10d   : > { %v435_v3 = vadd.f32 1e-05, %v427_v60  ;;  %v317_v8 = vadd.f32 %v301_v62, %v277_v63  ;;  %v412_v13 = vmul.f32 %v396_v4, %v396_v4  ;;  %v452_v55 = vsub.f32 %v1569_v17, %v396_v4 }
 0x10e   : > { %v468_v56 = vsub.f32 %v1566_v16, %v396_v4 }
 0x10f   : > { %1133 = vrsqrt.f32 %v435_v3  ;;  %v1661_v12 = vmul.f32 0.0078125, %v317_v8 }
 0x110   : > { %v370_v9 = vpop.xlane.xlu1 %369  ;;  %v338_v10 = vpop.xlane.xlu0 %337 }
 0x111   : > { %v388_v11 = vadd.f32 %v370_v9, %v338_v10  ;;  %v413_v31 = vmul.f32 %v1661_v12, %v1661_v12  ;;  %v453_v10 = vsub.f32 %v1579_v21, %v1661_v12  ;;  %v469_v17 = vsub.f32 %v1576_v20, %v1661_v12 }
 0x113   : > { %v404_v14 = vmul.f32 0.0078125, %v388_v11 }
 0x114   : > { %v373_v15 = vpop.xlane.xlu1 %372  ;;  %v341_v22 = vpop.xlane.xlu0 %340 }
 0x115   : > { %v1132_v25 = vpop.eup %1131  ;;  %v420_v26 = vsub.f32 %v404_v14, %v412_v13  ;;  %v389_v27 = vadd.f32 %v373_v15, %v341_v22 }
 0x116   : > { %v474_v28 = vmul.f32 %v1132_v25, %v466_v23  ;;  %v458_v29 = vmul.f32 %v1132_v25, %v450_v24 }
 0x117   : > { %v428_v30 = vmax.f32 %v420_v26, 0.0  ;;  %v405_v34 = vmul.f32 0.0078125, %v389_v27 }
 0x118   : > { %v304_v39 = vpop.xlane.xlu1 %303  ;;  %980 = vmatprep.mubr.msk.f32.mxu1 %vm265_vm0, %v474_v28  ;;  %1008 = vmatprep.mubr.msk.f32.mxu0 %vm265_vm0, %v458_v29  ;;  %v280_v1 = vpop.xlane.xlu0 %279 }
 0x119   : > { %v1134_v5 = vpop.eup %1133  ;;  %v436_v40 = vadd.f32 1e-05, %v428_v30  ;;  %v421_v41 = vsub.f32 %v405_v34, %v413_v31  ;;  %v318_v45 = vadd.f32 %v304_v39, %v280_v1 }
 0x11a   : > { %v475_v42 = vmul.f32 %v1134_v5, %v467_v38  ;;  %v459_v43 = vmul.f32 %v1134_v5, %v451_v35 }
 0x11b   : > { %1135 = vrsqrt.f32 %v436_v40  ;;  %v429_v44 = vmax.f32 %v421_v41, 0.0  ;;  %v398_v46 = vmul.f32 0.0078125, %v318_v45 }
 0x11c   : > { %v307_v47 = vpop.xlane.xlu1 %306  ;;  %981 = vmatmul.mubr.msk.f32.vlgmr.msra.gmra.mrb[0].mxu1 %vm265_vm0, %v475_v42  ;;  %1009 = vmatmul.mubr.msk.f32.vlgmr.msra.gmra.mrb[0].mxu0 %vm265_vm0, %v459_v43  ;;  %v283_v0 = vpop.xlane.xlu0 %282 }
 0x11d   : > { %v437_v2 = vadd.f32 1e-05, %v429_v44  ;;  %v319_v48 = vadd.f32 %v307_v47, %v283_v0  ;;  %v414_v53 = vmul.f32 %v398_v46, %v398_v46  ;;  %v454_v35 = vsub.f32 %v1601_v33, %v398_v46 }
 0x11e   : > { %v470_v38 = vsub.f32 %v1598_v32, %v398_v46 }
 0x11f   : > { %1137 = vrsqrt.f32 %v437_v2  ;;  %v1673_v52 = vmul.f32 0.0078125, %v319_v48 }
 0x120   : > { %v376_v49 = vpop.xlane.xlu1 %375  ;;  %v344_v50 = vpop.xlane.xlu0 %343 }
 0x121   : > { %v390_v51 = vadd.f32 %v376_v49, %v344_v50  ;;  %v415_v8 = vmul.f32 %v1673_v52, %v1673_v52  ;;  %v455_v0 = vsub.f32 %v1611_v37, %v1673_v52  ;;  %v471_v2 = vsub.f32 %v1608_v36, %v1673_v52 }
 0x123   : > { %v406_v54 = vmul.f32 0.0078125, %v390_v51 }
 0x124   : > { %v379_v57 = vpop.xlane.xlu1 %378  ;;  %v347_v58 = vpop.xlane.xlu0 %346 }
 0x125   : > { %v1136_v59 = vpop.eup %1135  ;;  %v422_v60 = vsub.f32 %v406_v54, %v414_v53  ;;  %v391_v61 = vadd.f32 %v379_v57, %v347_v58 }
 0x126   : > { %v476_v62 = vmul.f32 %v1136_v59, %v468_v56  ;;  %v460_v63 = vmul.f32 %v1136_v59, %v452_v55 }
 0x127   : > { %v430_v3 = vmax.f32 %v422_v60, 0.0  ;;  %v407_v9 = vmul.f32 0.0078125, %v391_v61 }
 0x128   : > { %v310_v11 = vpop.xlane.xlu1 %309  ;;  %983 = vmatprep.mubr.msk.f32.mxu1 %vm265_vm0, %v476_v62  ;;  %1011 = vmatprep.mubr.msk.f32.mxu0 %vm265_vm0, %v460_v63  ;;  %v286_v16 = vpop.xlane.xlu0 %285 }
 0x129   : > { %v1138_v4 = vpop.eup %1137  ;;  %v438_v13 = vadd.f32 1e-05, %v430_v3  ;;  %v423_v14 = vsub.f32 %v407_v9, %v415_v8  ;;  %v320_v24 = vadd.f32 %v310_v11, %v286_v16 }
 0x12a   : > { %v477_v15 = vmul.f32 %v1138_v4, %v469_v17  ;;  %v461_v22 = vmul.f32 %v1138_v4, %v453_v10 }
 0x12b   : > { %1139 = vrsqrt.f32 %v438_v13  ;;  %v431_v23 = vmax.f32 %v423_v14, 0.0  ;;  %v400_v12 = vmul.f32 0.0078125, %v320_v24 }
 0x12c   : > { %v313_v25 = vpop.xlane.xlu1 %312  ;;  %984 = vmatmul.mubr.msk.f32.gmra.mrb[2].mxu1 %vm265_vm0, %v477_v15  ;;  %1012 = vmatmul.mubr.msk.f32.gmra.mrb[2].mxu0 %vm265_vm0, %v461_v22  ;;  %v289_v20 = vpop.xlane.xlu0 %288 }
 0x12d   : > { %v439_v21 = vadd.f32 1e-05, %v431_v23  ;;  %v321_v26 = vadd.f32 %v313_v25, %v289_v20  ;;  %v416_v31 = vmul.f32 %v400_v12, %v400_v12  ;;  %v456_v36 = vsub.f32 %v1633_v7, %v400_v12 }
 0x12e   : > { %v472_v37 = vsub.f32 %v1630_v6, %v400_v12 }
 0x12f   : > { %1141 = vrsqrt.f32 %v439_v21  ;;  %v401_v30 = vmul.f32 0.0078125, %v321_v26 }
 0x130   : > { %v382_v27 = vpop.xlane.xlu1 %381  ;;  %v350_v28 = vpop.xlane.xlu0 %349 }
 0x131   : > { %v392_v29 = vadd.f32 %v382_v27, %v350_v28  ;;  %v417_v45 = vmul.f32 %v401_v30, %v401_v30  ;;  %v457_v55 = vsub.f32 %v1643_v19, %v401_v30  ;;  %v473_v56 = vsub.f32 %v1640_v18, %v401_v30  ;;  %v923_v19 = vld [vmem:[%s1781_s3] ss:$0 sm:$0xff] }
 0x133   : > { %v408_v34 = vmul.f32 0.0078125, %v392_v29 }
 0x134   : > { %v385_v39 = vpop.xlane.xlu1 %384  ;;  %v353_v1 = vpop.xlane.xlu0 %352 }
 0x135   : > { %v1140_v5 = vpop.eup %1139  ;;  %v424_v40 = vsub.f32 %v408_v34, %v416_v31  ;;  %v393_v41 = vadd.f32 %v385_v39, %v353_v1 }
 0x136   : > { %v478_v42 = vmul.f32 %v1140_v5, %v470_v38  ;;  %v462_v43 = vmul.f32 %v1140_v5, %v454_v35 }
 0x137   : > { %v432_v44 = vmax.f32 %v424_v40, 0.0  ;;  %v409_v47 = vmul.f32 0.0078125, %v393_v41 }
 0x138   : > { %986 = vmatprep.mubr.msk.f32.mxu1 %vm265_vm0, %v478_v42  ;;  %1014 = vmatprep.mubr.msk.f32.mxu0 %vm265_vm0, %v462_v43 }
 0x139   : > { %v1142_v32 = vpop.eup %1141  ;;  %v440_v33 = vadd.f32 1e-05, %v432_v44  ;;  %v425_v46 = vsub.f32 %v409_v47, %v417_v45 }
 0x13a   : > { %v479_v48 = vmul.f32 %v1142_v32, %v471_v2  ;;  %v463_v49 = vmul.f32 %v1142_v32, %v455_v0 }
 0x13b   : > { %1143 = vrsqrt.f32 %v440_v33  ;;  %v433_v50 = vmax.f32 %v425_v46, 0.0 }
 0x13c   : > { %987 = vmatmul.mubr.msk.f32.gmra.mrb[4].mxu1 %vm265_vm0, %v479_v48  ;;  %1015 = vmatmul.mubr.msk.f32.gmra.mrb[4].mxu0 %vm265_vm0, %v463_v49 }
 0x13d   : > { %v441_v51 = vadd.f32 1e-05, %v433_v50 }
 0x13f   : > { %1145 = vrsqrt.f32 %v441_v51 }
 0x145   : > { %v1144_v52 = vpop.eup %1143 }
 0x146   : > { %v480_v53 = vmul.f32 %v1144_v52, %v472_v37  ;;  %v464_v54 = vmul.f32 %v1144_v52, %v456_v36 }
 0x148   : > { %989 = vmatprep.mubr.msk.f32.mxu1 %vm265_vm0, %v480_v53  ;;  %1017 = vmatprep.mubr.msk.f32.mxu0 %vm265_vm0, %v464_v54 }
 0x149   : > { %v1146_v57 = vpop.eup %1145 }
 0x14a   : > { %v481_v58 = vmul.f32 %v1146_v57, %v473_v56  ;;  %v465_v59 = vmul.f32 %v1146_v57, %v457_v55 }
 0x14c   : > { %990 = vmatmul.mubr.msk.f32.gmra.mrb[6].mxu1 %vm265_vm0, %v481_v58  ;;  %1018 = vmatmul.mubr.msk.f32.gmra.mrb[6].mxu0 %vm265_vm0, %v465_v59 }
 0x1ef   : > { %v982_v6 = vpop.f32.mrb[0].mxu1  ;;  %v1010_v7 = vpop.f32.mrb[0].mxu0 }
 0x1f0   : > { %v723_v60 = vadd.f32 %v1010_v7, %v982_v6  ;;  %v588_v18 = vpop.f32.mrb[1].mxu1  ;;  %v717_v61 = vpop.f32.mrb[1].mxu0 }
 0x1f1   : > { %v718_v62 = vadd.f32 %v717_v61, %v588_v18 }
 0x1f2   : > { %v764_v63 = vadd.f32 %v923_v19, %v723_v60 }
 0x1f3   : > { %v763_v3 = vadd.f32 %v923_v19, %v718_v62 }
 0x1f4   : > { %772 = vst.msk [vmem:[%s1709_s12 + $0x8] sm:$0xff] %vm265_vm0, %v764_v63 }
 0x1f5   : > { %771 = vst.msk [vmem:[%s1709_s12] sm:$0xff] %vm265_vm0, %v763_v3 }
 0x1ff   : > { %v985_v8 = vpop.f32.mrb[2].mxu1  ;;  %v1013_v9 = vpop.f32.mrb[2].mxu0 }
 0x200   : > { %v733_v10 = vadd.f32 %v1013_v9, %v985_v8  ;;  %v598_v17 = vpop.f32.mrb[3].mxu1  ;;  %v727_v11 = vpop.f32.mrb[3].mxu0 }
 0x201   : > { %v728_v16 = vadd.f32 %v727_v11, %v598_v17 }
 0x202   : > { %v766_v4 = vadd.f32 %v923_v19, %v733_v10 }
 0x203   : > { %v765_v13 = vadd.f32 %v923_v19, %v728_v16 }
 0x204   : > { %774 = vst.msk [vmem:[%s1709_s12 + $0x18] sm:$0xff] %vm265_vm0, %v766_v4 }
 0x205   : > { %773 = vst.msk [vmem:[%s1709_s12 + $0x10] sm:$0xff] %vm265_vm0, %v765_v13 }
 0x20f   : > { %v988_v14 = vpop.f32.mrb[4].mxu1  ;;  %v1016_v15 = vpop.f32.mrb[4].mxu0 }
 0x210   : > { %v743_v22 = vadd.f32 %v1016_v15, %v988_v14  ;;  %v608_v23 = vpop.f32.mrb[5].mxu1  ;;  %v737_v24 = vpop.f32.mrb[5].mxu0 }
 0x211   : > { %v738_v25 = vadd.f32 %v737_v24, %v608_v23 }
 0x212   : > { %v768_v20 = vadd.f32 %v923_v19, %v743_v22 }
 0x213   : > { %v767_v21 = vadd.f32 %v923_v19, %v738_v25 }
 0x214   : > { %776 = vst.msk [vmem:[%s1709_s12 + $0x28] sm:$0xff] %vm265_vm0, %v768_v20 }
 0x215   : > { %775 = vst.msk [vmem:[%s1709_s12 + $0x20] sm:$0xff] %vm265_vm0, %v767_v21 }
 0x21f   : > { %v991_v12 = vpop.f32.mrb[6].mxu1  ;;  %v1019_v26 = vpop.f32.mrb[6].mxu0 }
 0x220   : > { %v753_v27 = vadd.f32 %v1019_v26, %v991_v12  ;;  %v618_v28 = vpop.f32.mrb[7].mxu1  ;;  %v747_v29 = vpop.f32.mrb[7].mxu0 }
 0x221   : > { %v748_v30 = vadd.f32 %v747_v29, %v618_v28 }
 0x222   : > { %v770_v31 = vadd.f32 %v923_v19, %v753_v27 }
 0x223   : > { %v769_v34 = vadd.f32 %v923_v19, %v748_v30 }
 0x224   : > { %778 = vst.msk [vmem:[%s1709_s12 + $0x38] sm:$0xff] %vm265_vm0, %v770_v31 }
 0x225   : > { %777 = vst.msk [vmem:[%s1709_s12 + $0x30] sm:$0xff] %vm265_vm0, %v769_v34 }
 0x226   : > { %1246 = shalt.err (!%p1243_p1)
}
 0x227   : > { %s1247_s10 = scalar_lea.hbm %s1728_s27, 1024  ;;  %s1251_s21 = scalar_lea.hbm %s1782_s4, 2048 }
 0x228   : > { %p1248_p13 = scmp.ne.s32.totalorder %s1728_s27, %s1247_s10  ;;  %p1252_p4 = scmp.lt.u32.totalorder %s1728_s27, %s1782_s4 }
 0x229   : > { %p1253_p5 = scmp.lt.u32.totalorder %s1251_s21, %s1247_s10  ;;  %p1255_p11 = scmp.lt.u32.totalorder %s1247_s10, %s1728_s27 }
 0x22a   : > { %p1249_p6 = pnand %p1248_p13, %p1796_p0 }
 0x22b   : > { %p1254_p8 = por %p1253_p5, %p1252_p4 }
 0x22c   : > { %p1250_p10 = pneg %p1249_p6 }
 0x22d   : > { %p1256_p2 = por %p1255_p11, %p1254_p8 }
 0x22f   : > { %p1257_p3 = pnand %p1256_p2, %p1250_p10 }
 0x231   : > { %1260 = shalt.err (!%p1257_p3)
}
 0x232   : > { %s1311_s12 = smov 128   ;;  %s1312_s30 = smov 8  }
 0x233   : > { %1070 = dma.vmem_to_hbm [thread:$0]  (%p1796_p0), %s1730_s6, 1024, %s1728_s27, %s780_s19, %s1311_s12, %s1311_s12, %s1312_s30  }
 0x234 PF: > { %s808_s25 = sand.u32 1, %s1291_s15   ;;  %p1797_p7 = scmp.ne.s32.totalorder %s1787_s22, 0 }
 0x235   : > { %p1798_p9 = scmp.ge.s32.totalorder %s1303_s18, 2  ;;  %s809_s7 = scalar_lea.sflag [#allocation4], %s808_s25 }
 0x237   : > { %p1084_p12 = pnand %p1798_p9, %p1797_p7 }
 0x239   : > { %1286 = dma.done.wait (!%p1084_p12), %s809_s7, 1024  }
 0x23a   : > { %1288 = vsyncadd (!%p1084_p12), %s809_s7, 4294966272  ;;  %p18_p1 = scmp.ge.s32.totalorder %s1454_s26, 4   ;;  %s1799_s15 = smov %s1295_s16 }
 0x23b   : > { %s1800_s16 = smov %s1299_s17  ;;  %s1801_s17 = smov %s1470_s14 }
 0x23c   : > { %s1802_s18 = smov %s1454_s26  ;;  %20 = sbr.rel (!%p18_p1) target bundleno = 6 (0x6), region = 90 }
 0x243   :  { %814 = vsyncpa [#allocation3], 1 }
 0x244   :  { %816 = vsyncpa [#allocation3 + $0x1], 1 }
 0x245   :  { %817 = vsyncpa [#allocation6], 1 }
 0x246   :  { %818 = vsyncpa [#allocation4], 1 }
 0x247   :  { %820 = vsyncpa [#allocation4 + $0x1], 1 }

</bundles_post_ra>
